<compile_context>
chip_gen: v7x
topology: tpu7x:2x2x1
jax: 0.10.0
libtpu: 0.0.40
codegen_flags: <defaults>
</compile_context>

<pallas_src>
import functools
import math

import jax
import jax.numpy as jnp
from jax.experimental import pallas as pl
from jax.experimental.pallas import tpu as pltpu


def _round_up(x, mult):
    return ((x + mult - 1) // mult) * mult


def _softplus(x):
    # Numerically-stable log(1 + exp(x)).
    return jnp.maximum(x, 0.0) + jnp.log(1.0 + jnp.exp(-jnp.abs(x)))


def _g_of_cos(cos, t):
    # mlambda[0](x) = 2 * ((x + 1) / 2) ** t - 1
    u = 0.5 * (cos + 1.0)
    if float(t).is_integer() and t >= 1:
        p = u
        for _ in range(int(t) - 1):          # integer power -> repeated multiply (VPU only)
            p = p * u
    else:
        p = u ** t                            # float exponent fallback (EUP)
    return 2.0 * p - 1.0


def _sphereface2_kernel(*refs, lamda, r, m, t, b, c_actual, tile_c, c_has_pad, with_cos):
    if with_cos:
        x_ref, wn_ref, lab_ref, cos_ref, loss_ref, xn_ref = refs
    else:
        x_ref, wn_ref, lab_ref, loss_ref, xn_ref = refs
        cos_ref = None

    j = pl.program_id(1)
    eps2 = jnp.float32(1e-24)  # (1e-12)**2, matches F.normalize eps on the norm

    # ---- per-B-tile prologue: normalize x once, zero the loss accumulator ----
    @pl.when(j == 0)
    def _():
        x = x_ref[...].astype(jnp.float32)                                   # (TB, D)
        inv = jax.lax.rsqrt(
            jnp.maximum(jnp.sum(x * x, axis=-1, keepdims=True), eps2))
        xn_ref[...] = (x * inv).astype(xn_ref.dtype)
        loss_ref[...] = jnp.zeros_like(loss_ref)

    # ---- cosine similarities on the MXU (weight is pre-normalized, pre-transposed) ----
    cos = jnp.dot(xn_ref[...], wn_ref[...],
                  preferred_element_type=jnp.float32)                        # (TB, TC)
    cos = jnp.clip(cos, -1.0, 1.0)
    if cos_ref is not None:
        cos_ref[...] = cos.astype(cos_ref.dtype)

    # ---- negative branch over the whole tile -------------------------------------
    g = _g_of_cos(cos, t)
    cos_n = ((1.0 - lamda) / r) * _softplus(r * (g + m) + b)

    tb, tc = cos.shape
    lab = lab_ref[...]                                                        # (TB, 1) int32
    col_ids = j * tile_c + jax.lax.broadcasted_iota(jnp.int32, (tb, tc), 1)
    is_lab = col_ids == lab

    # ---- positive branch only at the label column ((TB, 1) slice) -----------------
    cos_lab = jnp.sum(jnp.where(is_lab, cos, 0.0), axis=1, keepdims=True)     # (TB, 1)
    in_tile = jnp.logical_and(lab >= j * tile_c, lab < (j + 1) * tile_c)
    has_lab = in_tile.astype(jnp.float32)                                     # (TB, 1) 0/1
    g_l = _g_of_cos(cos_lab, t)
    cp_l = (lamda / r) * _softplus(-(r * (g_l - m) + b))
    cn_l = ((1.0 - lamda) / r) * _softplus(r * (g_l + m) + b)
    pos_term = has_lab * (cp_l - cn_l)

    # ---- accumulate: loss_row += sum_neg(valid cols) - cos_n(label) + cos_p(label) --
    nc = pl.num_programs(1)
    if c_has_pad:
        @pl.when(j < nc - 1)
        def _():
            loss_ref[...] += jnp.sum(cos_n, axis=1, keepdims=True) + pos_term

        @pl.when(j == nc - 1)
        def _():
            masked = jnp.where(col_ids < c_actual, cos_n, 0.0)
            loss_ref[...] += jnp.sum(masked, axis=1, keepdims=True) + pos_term
    else:
        loss_ref[...] += jnp.sum(cos_n, axis=1, keepdims=True) + pos_term


def prepare_weight(weight, *, tile_c=1024, matmul_dtype=jnp.bfloat16):
    """One-time weight preprocessing (can be cached across training steps):
    pad -> L2-normalize (eps keeps padded rows exactly zero) -> cast -> transpose."""
    C, D = weight.shape
    Dp = _round_up(D, 128)
    TC = _round_up(min(tile_c, _round_up(C, 128)), 128)
    Cp = _round_up(C, TC)
    w = weight.astype(jnp.float32)
    if (Cp, Dp) != (C, D):
        w = jnp.pad(w, ((0, Cp - C), (0, Dp - D)))
    inv = jax.lax.rsqrt(jnp.maximum(jnp.sum(w * w, axis=-1, keepdims=True),
                                    jnp.float32(1e-24)))
    wn_t = jnp.transpose((w * inv).astype(matmul_dtype))                      # (Dp, Cp)
    return wn_t, C, D, TC, Cp, Dp


def sphereface2_forward(x, weight, label, *, lamda=0.7, r=30, m=0.4, t=3, b=0.6,
                        matmul_dtype=jnp.bfloat16, cos_dtype=jnp.float32,
                        tile_b=512, tile_c=1024, return_cos=True,
                        weight_prepared=None):
    """x: (B, D) f32, weight: (C, D) f32, label: (B,) int.
    Returns (cos_theta or None, loss_mean)."""
    B, D = x.shape
    if weight_prepared is None:
        weight_prepared = prepare_weight(weight, tile_c=tile_c, matmul_dtype=matmul_dtype)
    wn_t, C, Dw, TC, Cp, Dp = weight_prepared
    assert D == Dw

    TB = _round_up(min(tile_b, _round_up(B, 8)), 8)
    Bp = _round_up(B, TB)
    c_has_pad = (Cp != C)

    xp = x.astype(jnp.float32)
    if (Bp, Dp) != (B, D):
        xp = jnp.pad(xp, ((0, Bp - B), (0, Dp - D)))
    labp = label.astype(jnp.int32)
    if Bp != B:
        labp = jnp.pad(labp, (0, Bp - B))
    labp = labp.reshape(Bp, 1)

    kernel = functools.partial(
        _sphereface2_kernel,
        lamda=float(lamda), r=float(r), m=float(m), t=float(t), b=float(b),
        c_actual=C, tile_c=TC, c_has_pad=c_has_pad, with_cos=return_cos)

    # VMEM budget: double-buffered x / weight / cos tiles + xn scratch (+ margin).
    mm_isz = jnp.dtype(matmul_dtype).itemsize
    cos_isz = jnp.dtype(cos_dtype).itemsize
    est = (2 * (TB * Dp * 4 + Dp * TC * mm_isz + TB * 4 * 2)
           + (2 * TB * TC * cos_isz if return_cos else 0)
           + TB * Dp * mm_isz)
    vmem_limit = int(min(max(int(est * 1.5), 32 << 20), 50 << 20))

    out_shape = []
    out_specs = []
    if return_cos:
        out_shape.append(jax.ShapeDtypeStruct((Bp, Cp), cos_dtype))
        out_specs.append(pl.BlockSpec((TB, TC), lambda i, j: (i, j)))
    out_shape.append(jax.ShapeDtypeStruct((Bp, 1), jnp.float32))
    out_specs.append(pl.BlockSpec((TB, 1), lambda i, j: (i, 0)))   # resident accumulator

    outs = pl.pallas_call(
        kernel,
        out_shape=tuple(out_shape),
        grid_spec=pltpu.PrefetchScalarGridSpec(
            num_scalar_prefetch=0,
            grid=(Bp // TB, Cp // TC),
            in_specs=[
                pl.BlockSpec((TB, Dp), lambda i, j: (i, 0)),       # x
                pl.BlockSpec((Dp, TC), lambda i, j: (0, j)),       # pre-normalized W^T
                pl.BlockSpec((TB, 1), lambda i, j: (i, 0)),        # labels
            ],
            out_specs=out_specs,
            scratch_shapes=[pltpu.VMEM((TB, Dp), matmul_dtype)],   # normalized x, reused
        ),
        compiler_params=pltpu.CompilerParams(
            dimension_semantics=("parallel", "arbitrary"),
            vmem_limit_bytes=vmem_limit),
    )(xp, wn_t, labp)

    if return_cos:
        cos_pad, loss_rows = outs
        cos_theta = cos_pad if (Bp == B and Cp == C) else cos_pad[:B, :C]
    else:
        (loss_rows,) = outs
        cos_theta = None

    loss_rows = loss_rows if Bp == B else loss_rows[:B]
    loss_mean = jnp.mean(loss_rows)
    return cos_theta, loss_mean


def _xavier_uniform(key, out_features, in_features):
    # Matches nn.init.xavier_uniform_ for a 2-D (out, in) weight.
    bound = math.sqrt(6.0 / (in_features + out_features))
    return jax.random.uniform(key, (out_features, in_features),
                              dtype=jnp.float32, minval=-bound, maxval=bound)


def _reference(x, weight, label, *, lamda=0.7, r=30.0, m=0.4, t=3.0, b=0.6):
    # Faithful translation of the PyTorch forward (same formulas, f32).
    def norm(a):
        n = jnp.sqrt(jnp.sum(a * a, axis=-1, keepdims=True))
        return a / jnp.maximum(n, 1e-12)
    cos = jnp.clip(norm(x) @ norm(weight).T, -1.0, 1.0)
    g = 2.0 * ((cos + 1.0) / 2.0) ** t - 1.0
    cmt = r * (g - m) + b
    cmt1 = r * (g + m) + b
    cp = lamda / r * jnp.log(1.0 + jnp.exp(-cmt))
    cn = (1.0 - lamda) / r * jnp.log(1.0 + jnp.exp(cmt1))
    oh = jax.nn.one_hot(label, cos.shape[1], dtype=jnp.float32)
    loss = jnp.sum(oh * cp + (1.0 - oh) * cn, axis=1)
    return cos, jnp.mean(loss)


if __name__ == "__main__":
    key = jax.random.PRNGKey(0)

    # --- test 1: module-sized toy shapes, f32 matmul path (strict tolerance) ------
    in_features, out_features, batch = 32, 16, 8
    kx, kw, kl = jax.random.split(key, 3)
    x = jax.random.normal(kx, (batch, in_features), dtype=jnp.float32)
    weight = _xavier_uniform(kw, out_features, in_features)
    label = jax.random.randint(kl, (batch,), 0, out_features, dtype=jnp.int32)

    cos_theta, loss = sphereface2_forward(x, weight, label,
                                          matmul_dtype=jnp.float32)
    jax.block_until_ready((cos_theta, loss))
    cos_ref, loss_ref = _reference(x, weight, label)
    assert jnp.allclose(cos_theta, cos_ref, atol=2e-5), "cos_theta mismatch (test 1)"
    assert jnp.allclose(loss, loss_ref, atol=2e-5), "loss mismatch (test 1)"

    # --- test 2: multi-tile grid + padding on every axis, f32 path (strict) --------
    in_features2, out_features2, batch2 = 96, 300, 20
    kx2, kw2, kl2 = jax.random.split(jax.random.PRNGKey(1), 3)
    x2 = jax.random.normal(kx2, (batch2, in_features2), dtype=jnp.float32)
    weight2 = _xavier_uniform(kw2, out_features2, in_features2)
    label2 = jax.random.randint(kl2, (batch2,), 0, out_features2, dtype=jnp.int32)

    cos2, loss2 = sphereface2_forward(x2, weight2, label2, tile_b=8, tile_c=128,
                                      matmul_dtype=jnp.float32)
    jax.block_until_ready((cos2, loss2))
    cos2_ref, loss2_ref = _reference(x2, weight2, label2)
    assert jnp.allclose(cos2, cos2_ref, atol=1e-4), "cos_theta mismatch (test 2)"
    assert jnp.allclose(loss2, loss2_ref, atol=5e-5), "loss mismatch (test 2)"

    # --- test 3: same shapes, default bf16 fast path (looser tolerance) ------------
    cos3, loss3 = sphereface2_forward(x2, weight2, label2, tile_b=8, tile_c=128)
    jax.block_until_ready((cos3, loss3))
    assert jnp.allclose(cos3, cos2_ref, atol=3e-2), "cos_theta mismatch (test 3, bf16)"
    assert jnp.allclose(loss3, loss2_ref, atol=3e-2), "loss mismatch (test 3, bf16)"

    # --- test 4: loss-only mode (no cos writeback), bf16 ---------------------------
    cos4, loss4 = sphereface2_forward(x2, weight2, label2, tile_b=8, tile_c=128,
                                      return_cos=False)
    jax.block_until_ready(loss4)
    assert cos4 is None
    assert jnp.allclose(loss4, loss2_ref, atol=3e-2), "loss mismatch (test 4, loss-only)"

    print("KERNEL_OK")
</pallas_src>

<mosaic_0001>
module attributes {stable_mosaic.version = 11 : i64} {
  func.func @_sphereface2_kernel(%arg0: i32, %arg1: i32, %arg2: memref<8x128xf32, #tpu.memory_space<vmem>>, %arg3: memref<128x128xf32, #tpu.memory_space<vmem>>, %arg4: memref<8x1xi32, #tpu.memory_space<vmem>>, %arg5: memref<8x128xf32, #tpu.memory_space<vmem>>, %arg6: memref<8x1xf32, #tpu.memory_space<vmem>>, %arg7: memref<8x128xf32, #tpu.memory_space<vmem>>) attributes {dimension_semantics = [#tpu.dimension_semantics<parallel>, #tpu.dimension_semantics<arbitrary>], iteration_bounds = array<i64: 1, 1>, scalar_prefetch = 0 : i64, scratch_operands = 1 : i64, tpu.core_type = #tpu.core_type<tc>, window_params = [{transform_indices = @transform_0, window_bounds = array<i64: 8, 128>}, {transform_indices = @transform_1, window_bounds = array<i64: 128, 128>}, {transform_indices = @transform_2, window_bounds = array<i64: 8, 1>}, {transform_indices = @transform_3, window_bounds = array<i64: 8, 128>}, {transform_indices = @transform_4, window_bounds = array<i64: 8, 1>}]} {
    %c0_i32 = arith.constant 0 : i32
    %0 = arith.cmpi eq, %arg1, %c0_i32 : i32
    %1 = arith.extui %0 : i1 to i32
    %cst = arith.constant 1.000000e-24 : f32
    %c0_i32_0 = arith.constant 0 : i32
    %2 = arith.cmpi ne, %1, %c0_i32_0 : i32
    scf.if %2 {
      %c0_49 = arith.constant 0 : index
      %c0_50 = arith.constant 0 : index
      %116 = vector.load %arg2[%c0_49, %c0_50] : memref<8x128xf32, #tpu.memory_space<vmem>>, vector<8x128xf32>
      %117 = arith.mulf %116, %116 : vector<8x128xf32>
      %cst_51 = arith.constant dense<0.000000e+00> : vector<8xf32>
      %118 = vector.multi_reduction <add>, %117, %cst_51 [1] : vector<8x128xf32> to vector<8xf32>
      %119 = vector.shape_cast %118 : vector<8xf32> to vector<8x1xf32>
      %120 = vector.broadcast %cst : f32 to vector<8x1xf32>
      %121 = arith.maximumf %119, %120 : vector<8x1xf32>
      %122 = math.rsqrt %121 : vector<8x1xf32>
      %123 = vector.broadcast %122 : vector<8x1xf32> to vector<8x128xf32>
      %124 = arith.mulf %116, %123 : vector<8x128xf32>
      %c0_52 = arith.constant 0 : index
      %c0_53 = arith.constant 0 : index
      %125 = vector.load %arg7[%c0_52, %c0_53] : memref<8x128xf32, #tpu.memory_space<vmem>>, vector<8x128xf32>
      tpu.vector_store %arg7[%c0_52, %c0_53], %124 {strides = array<i32>} : memref<8x128xf32, #tpu.memory_space<vmem>>, vector<8x128xf32>,
      %cst_54 = arith.constant 0.000000e+00 : f32
      %126 = vector.broadcast %cst_54 : f32 to vector<8x1xf32>
      %c0_55 = arith.constant 0 : index
      %c0_56 = arith.constant 0 : index
      %127 = vector.load %arg6[%c0_55, %c0_56] : memref<8x1xf32, #tpu.memory_space<vmem>>, vector<8x1xf32>
      tpu.vector_store %arg6[%c0_55, %c0_56], %126 {strides = array<i32>} : memref<8x1xf32, #tpu.memory_space<vmem>>, vector<8x1xf32>,
    } else {
    }
    %c0 = arith.constant 0 : index
    %c0_1 = arith.constant 0 : index
    %3 = vector.load %arg7[%c0, %c0_1] : memref<8x128xf32, #tpu.memory_space<vmem>>, vector<8x128xf32>
    %c0_2 = arith.constant 0 : index
    %c0_3 = arith.constant 0 : index
    %4 = vector.load %arg3[%c0_2, %c0_3] : memref<128x128xf32, #tpu.memory_space<vmem>>, vector<128x128xf32>
    %cst_4 = arith.constant dense<0.000000e+00> : vector<8x128xf32>
    %5 = tpu.matmul %3, %4, %cst_4 {dimension_numbers = #tpu.dot_dimension_numbers<[1], [0], [0], [1], [0, 0, 1, 1], [], []>} : vector<8x128xf32>, vector<128x128xf32>, vector<8x128xf32> -> vector<8x128xf32>
    %cst_5 = arith.constant -1.000000e+00 : f32
    %cst_6 = arith.constant 1.000000e+00 : f32
    %6 = vector.broadcast %cst_5 : f32 to vector<8x128xf32>
    %7 = arith.maximumf %6, %5 : vector<8x128xf32>
    %8 = vector.broadcast %cst_6 : f32 to vector<8x128xf32>
    %9 = arith.minimumf %8, %7 : vector<8x128xf32>
    %c0_7 = arith.constant 0 : index
    %c0_8 = arith.constant 0 : index
    %10 = vector.load %arg5[%c0_7, %c0_8] : memref<8x128xf32, #tpu.memory_space<vmem>>, vector<8x128xf32>
    tpu.vector_store %arg5[%c0_7, %c0_8], %9 {strides = array<i32>} : memref<8x128xf32, #tpu.memory_space<vmem>>, vector<8x128xf32>,
    %cst_9 = arith.constant 1.000000e+00 : f32
    %11 = vector.broadcast %cst_9 : f32 to vector<8x128xf32>
    %12 = arith.addf %9, %11 : vector<8x128xf32>
    %cst_10 = arith.constant 5.000000e-01 : f32
    %13 = vector.broadcast %cst_10 : f32 to vector<8x128xf32>
    %14 = arith.mulf %13, %12 : vector<8x128xf32>
    %15 = arith.mulf %14, %14 : vector<8x128xf32>
    %16 = arith.mulf %15, %14 : vector<8x128xf32>
    %cst_11 = arith.constant 2.000000e+00 : f32
    %17 = vector.broadcast %cst_11 : f32 to vector<8x128xf32>
    %18 = arith.mulf %17, %16 : vector<8x128xf32>
    %cst_12 = arith.constant 1.000000e+00 : f32
    %19 = vector.broadcast %cst_12 : f32 to vector<8x128xf32>
    %20 = arith.subf %18, %19 : vector<8x128xf32>
    %cst_13 = arith.constant 4.000000e-01 : f32
    %21 = vector.broadcast %cst_13 : f32 to vector<8x128xf32>
    %22 = arith.addf %20, %21 : vector<8x128xf32>
    %cst_14 = arith.constant 3.000000e+01 : f32
    %23 = vector.broadcast %cst_14 : f32 to vector<8x128xf32>
    %24 = arith.mulf %23, %22 : vector<8x128xf32>
    %cst_15 = arith.constant 6.000000e-01 : f32
    %25 = vector.broadcast %cst_15 : f32 to vector<8x128xf32>
    %26 = arith.addf %24, %25 : vector<8x128xf32>
    %cst_16 = arith.constant 0.000000e+00 : f32
    %27 = vector.broadcast %cst_16 : f32 to vector<8x128xf32>
    %28 = arith.maximumf %26, %27 : vector<8x128xf32>
    %29 = math.absf %26 : vector<8x128xf32>
    %cst_17 = arith.constant 0.000000e+00 : f32
    %30 = vector.broadcast %cst_17 : f32 to vector<8x128xf32>
    %31 = arith.subf %30, %29 : vector<8x128xf32>
    %32 = math.exp %31 : vector<8x128xf32>
    %cst_18 = arith.constant 1.000000e+00 : f32
    %33 = vector.broadcast %cst_18 : f32 to vector<8x128xf32>
    %34 = arith.addf %33, %32 : vector<8x128xf32>
    %35 = math.log %34 : vector<8x128xf32>
    %36 = arith.addf %28, %35 : vector<8x128xf32>
    %cst_19 = arith.constant 0.00999999977 : f32
    %37 = vector.broadcast %cst_19 : f32 to vector<8x128xf32>
    %38 = arith.mulf %37, %36 : vector<8x128xf32>
    %c0_20 = arith.constant 0 : index
    %c0_21 = arith.constant 0 : index
    %39 = vector.load %arg4[%c0_20, %c0_21] : memref<8x1xi32, #tpu.memory_space<vmem>>, vector<8x1xi32>
    %c128_i32 = arith.constant 128 : i32
    %40 = arith.muli %arg1, %c128_i32 : i32
    %41 = tpu.iota {dimensions = array<i32: 1>} : vector<8x128xi32>
    %42 = vector.broadcast %40 : i32 to vector<8x128xi32>
    %43 = arith.addi %42, %41 : vector<8x128xi32>
    %44 = vector.broadcast %39 : vector<8x1xi32> to vector<8x128xi32>
    %45 = arith.cmpi eq, %43, %44 : vector<8x128xi32>
    %cst_22 = arith.constant 0.000000e+00 : f32
    %46 = vector.broadcast %cst_22 : f32 to vector<8x128xf32>
    %47 = arith.select %45, %9, %46 : vector<8x128xi1>, vector<8x128xf32>
    %cst_23 = arith.constant dense<0.000000e+00> : vector<8xf32>
    %48 = vector.multi_reduction <add>, %47, %cst_23 [1] : vector<8x128xf32> to vector<8xf32>
    %49 = vector.shape_cast %48 : vector<8xf32> to vector<8x1xf32>
    %c128_i32_24 = arith.constant 128 : i32
    %50 = arith.muli %arg1, %c128_i32_24 : i32
    %51 = vector.broadcast %50 : i32 to vector<8x1xi32>
    %52 = arith.cmpi sge, %39, %51 : vector<8x1xi32>
    %c1_i32 = arith.constant 1 : i32
    %53 = arith.addi %arg1, %c1_i32 : i32
    %c128_i32_25 = arith.constant 128 : i32
    %54 = arith.muli %53, %c128_i32_25 : i32
    %55 = vector.broadcast %54 : i32 to vector<8x1xi32>
    %56 = arith.cmpi slt, %39, %55 : vector<8x1xi32>
    %57 = arith.andi %52, %56 : vector<8x1xi1>
    %58 = arith.extui %57 : vector<8x1xi1> to vector<8x1xi32>
    %59 = arith.sitofp %58 : vector<8x1xi32> to vector<8x1xf32>
    %cst_26 = arith.constant 1.000000e+00 : f32
    %60 = vector.broadcast %cst_26 : f32 to vector<8x1xf32>
    %61 = arith.addf %49, %60 : vector<8x1xf32>
    %cst_27 = arith.constant 5.000000e-01 : f32
    %62 = vector.broadcast %cst_27 : f32 to vector<8x1xf32>
    %63 = arith.mulf %62, %61 : vector<8x1xf32>
    %64 = arith.mulf %63, %63 : vector<8x1xf32>
    %65 = arith.mulf %64, %63 : vector<8x1xf32>
    %cst_28 = arith.constant 2.000000e+00 : f32
    %66 = vector.broadcast %cst_28 : f32 to vector<8x1xf32>
    %67 = arith.mulf %66, %65 : vector<8x1xf32>
    %cst_29 = arith.constant 1.000000e+00 : f32
    %68 = vector.broadcast %cst_29 : f32 to vector<8x1xf32>
    %69 = arith.subf %67, %68 : vector<8x1xf32>
    %cst_30 = arith.constant 4.000000e-01 : f32
    %70 = vector.broadcast %cst_30 : f32 to vector<8x1xf32>
    %71 = arith.subf %69, %70 : vector<8x1xf32>
    %cst_31 = arith.constant 3.000000e+01 : f32
    %72 = vector.broadcast %cst_31 : f32 to vector<8x1xf32>
    %73 = arith.mulf %72, %71 : vector<8x1xf32>
    %cst_32 = arith.constant 6.000000e-01 : f32
    %74 = vector.broadcast %cst_32 : f32 to vector<8x1xf32>
    %75 = arith.addf %73, %74 : vector<8x1xf32>
    %cst_33 = arith.constant 0.000000e+00 : f32
    %76 = vector.broadcast %cst_33 : f32 to vector<8x1xf32>
    %77 = arith.subf %76, %75 : vector<8x1xf32>
    %cst_34 = arith.constant 0.000000e+00 : f32
    %78 = vector.broadcast %cst_34 : f32 to vector<8x1xf32>
    %79 = arith.maximumf %77, %78 : vector<8x1xf32>
    %80 = math.absf %77 : vector<8x1xf32>
    %cst_35 = arith.constant 0.000000e+00 : f32
    %81 = vector.broadcast %cst_35 : f32 to vector<8x1xf32>
    %82 = arith.subf %81, %80 : vector<8x1xf32>
    %83 = math.exp %82 : vector<8x1xf32>
    %cst_36 = arith.constant 1.000000e+00 : f32
    %84 = vector.broadcast %cst_36 : f32 to vector<8x1xf32>
    %85 = arith.addf %84, %83 : vector<8x1xf32>
    %86 = math.log %85 : vector<8x1xf32>
    %87 = arith.addf %79, %86 : vector<8x1xf32>
    %cst_37 = arith.constant 0.0233333334 : f32
    %88 = vector.broadcast %cst_37 : f32 to vector<8x1xf32>
    %89 = arith.mulf %88, %87 : vector<8x1xf32>
    %cst_38 = arith.constant 4.000000e-01 : f32
    %90 = vector.broadcast %cst_38 : f32 to vector<8x1xf32>
    %91 = arith.addf %69, %90 : vector<8x1xf32>
    %cst_39 = arith.constant 3.000000e+01 : f32
    %92 = vector.broadcast %cst_39 : f32 to vector<8x1xf32>
    %93 = arith.mulf %92, %91 : vector<8x1xf32>
    %cst_40 = arith.constant 6.000000e-01 : f32
    %94 = vector.broadcast %cst_40 : f32 to vector<8x1xf32>
    %95 = arith.addf %93, %94 : vector<8x1xf32>
    %cst_41 = arith.constant 0.000000e+00 : f32
    %96 = vector.broadcast %cst_41 : f32 to vector<8x1xf32>
    %97 = arith.maximumf %95, %96 : vector<8x1xf32>
    %98 = math.absf %95 : vector<8x1xf32>
    %cst_42 = arith.constant 0.000000e+00 : f32
    %99 = vector.broadcast %cst_42 : f32 to vector<8x1xf32>
    %100 = arith.subf %99, %98 : vector<8x1xf32>
    %101 = math.exp %100 : vector<8x1xf32>
    %cst_43 = arith.constant 1.000000e+00 : f32
    %102 = vector.broadcast %cst_43 : f32 to vector<8x1xf32>
    %103 = arith.addf %102, %101 : vector<8x1xf32>
    %104 = math.log %103 : vector<8x1xf32>
    %105 = arith.addf %97, %104 : vector<8x1xf32>
    %cst_44 = arith.constant 0.00999999977 : f32
    %106 = vector.broadcast %cst_44 : f32 to vector<8x1xf32>
    %107 = arith.mulf %106, %105 : vector<8x1xf32>
    %108 = arith.subf %89, %107 : vector<8x1xf32>
    %109 = arith.mulf %59, %108 : vector<8x1xf32>
    %c0_i32_45 = arith.constant 0 : i32
    %110 = arith.cmpi slt, %arg1, %c0_i32_45 : i32
    %111 = arith.extui %110 : i1 to i32
    %c0_i32_46 = arith.constant 0 : i32
    %112 = arith.cmpi ne, %111, %c0_i32_46 : i32
    scf.if %112 {
      %c0_49 = arith.constant 0 : index
      %c0_50 = arith.constant 0 : index
      %116 = vector.load %arg6[%c0_49, %c0_50] : memref<8x1xf32, #tpu.memory_space<vmem>>, vector<8x1xf32>
      %cst_51 = arith.constant dense<0.000000e+00> : vector<8xf32>
      %117 = vector.multi_reduction <add>, %38, %cst_51 [1] : vector<8x128xf32> to vector<8xf32>
      %118 = vector.shape_cast %117 : vector<8xf32> to vector<8x1xf32>
      %119 = arith.addf %118, %109 : vector<8x1xf32>
      %120 = arith.addf %116, %119 : vector<8x1xf32>
      %c0_52 = arith.constant 0 : index
      %c0_53 = arith.constant 0 : index
      %121 = vector.load %arg6[%c0_52, %c0_53] : memref<8x1xf32, #tpu.memory_space<vmem>>, vector<8x1xf32>
      tpu.vector_store %arg6[%c0_52, %c0_53], %120 {strides = array<i32>} : memref<8x1xf32, #tpu.memory_space<vmem>>, vector<8x1xf32>,
    } else {
    }
    %c0_i32_47 = arith.constant 0 : i32
    %113 = arith.cmpi eq, %arg1, %c0_i32_47 : i32
    %114 = arith.extui %113 : i1 to i32
    %c0_i32_48 = arith.constant 0 : i32
    %115 = arith.cmpi ne, %114, %c0_i32_48 : i32
    scf.if %115 {
      %c16_i32 = arith.constant 16 : i32
      %116 = vector.broadcast %c16_i32 : i32 to vector<8x128xi32>
      %117 = arith.cmpi slt, %43, %116 : vector<8x128xi32>
      %cst_49 = arith.constant 0.000000e+00 : f32
      %118 = vector.broadcast %cst_49 : f32 to vector<8x128xf32>
      %119 = arith.select %117, %38, %118 : vector<8x128xi1>, vector<8x128xf32>
      %c0_50 = arith.constant 0 : index
      %c0_51 = arith.constant 0 : index
      %120 = vector.load %arg6[%c0_50, %c0_51] : memref<8x1xf32, #tpu.memory_space<vmem>>, vector<8x1xf32>
      %cst_52 = arith.constant dense<0.000000e+00> : vector<8xf32>
      %121 = vector.multi_reduction <add>, %119, %cst_52 [1] : vector<8x128xf32> to vector<8xf32>
      %122 = vector.shape_cast %121 : vector<8xf32> to vector<8x1xf32>
      %123 = arith.addf %122, %109 : vector<8x1xf32>
      %124 = arith.addf %120, %123 : vector<8x1xf32>
      %c0_53 = arith.constant 0 : index
      %c0_54 = arith.constant 0 : index
      %125 = vector.load %arg6[%c0_53, %c0_54] : memref<8x1xf32, #tpu.memory_space<vmem>>, vector<8x1xf32>
      tpu.vector_store %arg6[%c0_53, %c0_54], %124 {strides = array<i32>} : memref<8x1xf32, #tpu.memory_space<vmem>>, vector<8x1xf32>,
    } else {
    }
    return
  }
  func.func @transform_0(%arg0: i32, %arg1: i32) -> (i32, i32) {
    %c0_i32 = arith.constant 0 : i32
    %c0_i32_0 = arith.constant 0 : i32
    return %arg0, %c0_i32 : i32, i32
  }
  func.func @transform_1(%arg0: i32, %arg1: i32) -> (i32, i32) {
    %c0_i32 = arith.constant 0 : i32
    %c0_i32_0 = arith.constant 0 : i32
    return %c0_i32, %arg1 : i32, i32
  }
  func.func @transform_2(%arg0: i32, %arg1: i32) -> (i32, i32) {
    %c0_i32 = arith.constant 0 : i32
    %c0_i32_0 = arith.constant 0 : i32
    return %arg0, %c0_i32 : i32, i32
  }
  func.func @transform_3(%arg0: i32, %arg1: i32) -> (i32, i32) {
    %c0_i32 = arith.constant 0 : i32
    return %arg0, %arg1 : i32, i32
  }
  func.func @transform_4(%arg0: i32, %arg1: i32) -> (i32, i32) {
    %c0_i32 = arith.constant 0 : i32
    %c0_i32_0 = arith.constant 0 : i32
    return %arg0, %c0_i32 : i32, i32
  }
}

</mosaic_0001>

<bundles_post_ra>
// kernel: tpu_custom_call.1
= control target key start
LH: loop header
LB: loop body
LE: loop exit
PB: predicated region body
PF: predicated region fallthrough
CT: control target
= control target key end

     0   :  { %10 = vsyncpa [#allocation4], 0  ;;  %s486_s0 = inlined_call_operand.vmem [shape: f32[8,128], index: 0, kind: input, shape index: {}]   ;;  %s487_s1 = inlined_call_operand.hbm [shape: f32[128,128], index: 1, kind: input, shape index: {}]   ;;  %s488_s2 = inlined_call_operand.vmem [shape: s32[8,1], index: 2, kind: input, shape index: {}]   ;;  %s489_s3 = inlined_call_operand.hbm [shape: f32[8,128], index: 3, kind: output, shape index: {0}]   ;;  %s490_s4 = inlined_call_operand.vmem [shape: f32[8,1], index: 4, kind: output, shape index: {1}]  }
   0x1   :  { %11 = vsyncpa [#allocation5], 0  ;;  %s404_s15 = smov [#allocation3]   ;;  %s356_s19 = scalar_lea.hbm %s487_s1, 2048 }
   0x2   :  { %s19_s16 = sshll.u32 %s404_s15, 4  ;;  %p357_p0 = scmp.ne.s32.totalorder %s487_s1, %s356_s19  ;;  %s20_s16 = int_to_ptr.vmem [resolvable:$true] %s19_s16 }
   0x3   :  { %p360_p1 = scmp.lt.u32.totalorder %s356_s19, %s487_s1 }
   0x5   :  { %p362_p2 = pnand %p360_p1, %p357_p0 }
   0x7   :  { %365 = shalt.err (!%p362_p2)
}
   0x8   :  { %s366_s24 = scalar_lea.vmem %s20_s16, 2048  ;;  %p371_p4 = scmp.lt.s32.totalorder %s20_s16, %s20_s16 }
   0x9   :  { %p367_p3 = scmp.ne.s32.totalorder %s20_s16, %s366_s24  ;;  %p372_p5 = scmp.lt.s32.totalorder %s366_s24, %s366_s24 }
   0xb   :  { %p373_p6 = por %p372_p5, %p371_p4 }
   0xd   :  { %p374_p7 = pnand %p373_p6, %p367_p3 }
   0xf   :  { %377 = shalt.err (!%p374_p7)
}
  0x10   :  { %s405_s25 = smov 128   ;;  %s406_s26 = smov 8  }
  0x11   :  { %25 = dma.hbm_to_vmem [thread:$0]  %s487_s1, 2048, %s20_s16, [#allocation4], %s405_s25, %s405_s25, %s406_s26  }
  0x12   :  { %400 = dma.done.wait [#allocation4], 2048  }
  0x13   :  { %401 = vsyncadd [#allocation4], 4294965248  ;;  %v407_v0 = vmov 0.0|0.0   ;;  %v35_v1 = vld [vmem:[%s486_s0] sm:$0xff]  ;;  %v47_v3 = vld [vmem:[#allocation3 + $0x8] sm:$0xff]  ;;  %vm43_vm0 = vcmask 7168   ;;  %v156_v34 = vlaneseq }
  0x14   :  { %309 = vmatprep.subr.bf16.mxu0 %v407_v0  ;;  %v46_v2 = vld [vmem:[#allocation3] sm:$0xff]  ;;  %v36_v4 = vmul.f32 %v35_v1, %v35_v1  ;;  %v48_v6 = vld [vmem:[#allocation3 + $0x10] sm:$0xff]  ;;  %v49_v7 = vld [vmem:[#allocation3 + $0x18] sm:$0xff]  ;;  %v408_v23 = vmov 0.0   ;;  %vm409_vm1 = vmmov 0   ;;  %v410_v29 = vmov 0  }
  0x15   :  { %v310_v5 = vpack.c.bf16 %v47_v3, %v46_v2  ;;  %v313_v8 = vpack.c.bf16 %v49_v7, %v48_v6  ;;  %v50_v9 = vld [vmem:[#allocation3 + $0x20] sm:$0xff]  ;;  %v51_v10 = vld [vmem:[#allocation3 + $0x28] sm:$0xff]  ;;  %v52_v12 = vld [vmem:[#allocation3 + $0x30] sm:$0xff]  ;;  %44 = vst.msk [vmem:[%s490_s4] sm:$0xff] %vm43_vm0, %v408_v23  ;;  %306 = vmatprep.mubr.msk.f32.mxu0 %vm409_vm1, %v408_v23  ;;  %341 = vset.pattern.permute.xlu0 %v410_v29  ;;  %v157_v35 = vand.u32 127, %v156_v34 }
  0x16   :  { %37 = vadd.xlane.f32.xlu0 %v36_v4  ;;  %v316_v11 = vpack.c.bf16 %v51_v10, %v50_v9  ;;  %v53_v13 = vld [vmem:[#allocation3 + $0x38] sm:$0xff]  ;;  %v54_v15 = vld [vmem:[#allocation3 + $0x40] sm:$0xff]  ;;  %v55_v16 = vld [vmem:[#allocation3 + $0x48] sm:$0xff] }
  0x17   :  { %311 = vmatpush3.bf16.msra.mxu0 %v310_v5  ;;  %v319_v14 = vpack.c.bf16 %v53_v13, %v52_v12  ;;  %v322_v17 = vpack.c.bf16 %v55_v16, %v54_v15  ;;  %v56_v18 = vld [vmem:[#allocation3 + $0x50] sm:$0xff]  ;;  %v57_v19 = vld [vmem:[#allocation3 + $0x58] sm:$0xff]  ;;  %v58_v21 = vld [vmem:[#allocation3 + $0x60] sm:$0xff]  ;;  %vm224_vm3 = vcmp.lt.s32.totalorder %v157_v35, 16 }
  0x18   :  { %312 = vmatprep.subr.bf16.mxu0 %v407_v0  ;;  %v325_v20 = vpack.c.bf16 %v57_v19, %v56_v18  ;;  %v59_v22 = vld [vmem:[#allocation3 + $0x68] sm:$0xff]  ;;  %v60_v25 = vld [vmem:[#allocation3 + $0x70] sm:$0xff]  ;;  %v61_v26 = vld [vmem:[#allocation3 + $0x78] sm:$0xff] }
  0x19   :  { %v328_v24 = vpack.c.bf16 %v59_v22, %v58_v21  ;;  %v331_v27 = vpack.c.bf16 %v61_v26, %v60_v25  ;;  %v461_v28 = vld [vmem:[%s488_s2] sm:$0xff]  ;;  %s411_s2 = smov [#allocation6]  }
  0x1a   :  { %s239_s7 = sshll.u32 %s411_s2, 4  ;;  %s240_s7 = int_to_ptr.vmem [resolvable:$true] %s239_s7 }
  0x1b   :  { %314 = vmatpush3.bf16.msra.mxu0 %v313_v8  ;;  %s378_s8 = scalar_lea.vmem %s240_s7, 128  ;;  %p383_p9 = scmp.lt.s32.totalorder %s240_s7, %s240_s7 }
  0x1c   :  { %315 = vmatprep.subr.bf16.mxu0 %v407_v0  ;;  %p379_p8 = scmp.ne.s32.totalorder %s240_s7, %s378_s8  ;;  %p384_p10 = scmp.lt.s32.totalorder %s378_s8, %s378_s8 }
  0x1e   :  { %p385_p11 = por %p384_p10, %p383_p9 }
  0x1f   :  { %317 = vmatpush3.bf16.msra.mxu0 %v316_v11 }
  0x20   :  { %318 = vmatprep.subr.bf16.mxu0 %v407_v0  ;;  %p386_p12 = pnand %p385_p11, %p379_p8 }
  0x23   :  { %320 = vmatpush3.bf16.msra.mxu0 %v319_v14 }
  0x24   :  { %321 = vmatprep.subr.bf16.mxu0 %v407_v0 }
  0x27   :  { %323 = vmatpush3.bf16.msra.mxu0 %v322_v17 }
  0x28   :  { %324 = vmatprep.subr.bf16.mxu0 %v407_v0 }
  0x2b   :  { %326 = vmatpush3.bf16.msra.mxu0 %v325_v20 }
  0x2c   :  { %327 = vmatprep.subr.bf16.mxu0 %v407_v0  ;;  %161 = vperm.xlu0 %341, %v461_v28  }
  0x2f   :  { %329 = vmatpush3.bf16.msra.mxu0 %v328_v24 }
  0x30   :  { %330 = vmatprep.subr.bf16.mxu0 %v407_v0 }
  0x33   :  { %332 = vmatpush3.bf16.msra.mxu0 %v331_v27 }
  0xa3   :  { %v38_v30 = vpop.xlane.xlu0 %37 }
  0xa4   :  { %v39_v31 = vmax.f32 %v38_v30, 1e-24 }
  0xa6   :  { %342 = vrsqrt.f32 %v39_v31 }
  0xab   :  { %v162_v36 = vpop.permute.xlu0 %161 }
  0xac   :  { %vm163_vm2 = vcmp.eq.s32.totalorder %v157_v35, %v162_v36 }
  0xb0   :  { %v343_v32 = vpop.eup %342 }
  0xb1   :  { %v41_v33 = vmul.f32 %v343_v32, %v35_v1 }
  0xb3   :  { %307 = vmatmul.mubr.f32.vlgmr.msra.gmra.mrb[0].mxu0 %v41_v33 }
 0x186   :  { %v128_v37 = vpop.f32.mrb[0].mxu0 }
 0x187   :  { %v252_v38 = vclamps-f32 %v128_v37, 1.0  ;;  %v308_v39 = vpop.f32.mrb[1].mxu0 }
 0x189   :  { %v135_v40 = vadd.f32 1.0, %v252_v38  ;;  %134 = vst [vmem:[#allocation6] sm:$0xff] %v252_v38  ;;  %v164_v41 = vsel %vm163_vm2, %v252_v38, 0.0 }
 0x18a   :  { %165 = vadd.xlane.f32.xlu1 %v164_v41 }
 0x18b   :  { %v136_v42 = vmul.f32 0.5, %v135_v40 }
 0x18d   :  { %v137_v43 = vmul.f32 %v136_v42, %v136_v42 }
 0x18f   :  { %v138_v44 = vmul.f32 %v137_v43, %v136_v42 }
 0x191   :  { %v139_v45 = vmul.f32 2.0, %v138_v44 }
 0x193   :  { %v253_v46 = vadd.f32 -1.0, %v139_v45 }
 0x195   :  { %v141_v47 = vadd.f32 0.4, %v253_v46 }
 0x197   :  { %v142_v48 = vmul.f32 30.0, %v141_v47 }
 0x199   :  { %v143_v49 = vadd.f32 0.6, %v142_v48 }
 0x19b   :  { %v145_v50 = vand.u32 2147483647, %v143_v49  ;;  %v144_v56 = vmax.f32 %v143_v49, 0.0 }
 0x19d   :  { %v146_v51 = vsub.f32 0.0, %v145_v50 }
 0x19f   :  { %v147_v52 = vmul.f32 1.442695, %v146_v51 }
 0x1a1   :  { %344 = vpow2.f32 %v147_v52 }
 0x1ab   :  { %v345_v53 = vpop.eup %344 }
 0x1ac   :  { %v149_v54 = vadd.f32 1.0, %v345_v53 }
 0x1ae   :  { %346 = vlog2.f32 %v149_v54 }
 0x1b8   :  { %v347_v55 = vpop.eup %346 }
 0x1b9   :  { %v151_v57 = vmul.f32 0.6931472, %v347_v55 }
 0x1bb   :  { %v152_v58 = vadd.f32 %v151_v57, %v144_v56 }
 0x1bd   :  { %v153_v59 = vmul.f32 0.01, %v152_v58 }
 0x1bf   :  { %v225_v60 = vsel %vm224_vm3, %v153_v59, 0.0 }
 0x1c0   :  { %227 = vadd.xlane.f32.xlu1 %v225_v60 }
 0x1c1   :  { %389 = shalt.err (!%p386_p12)
}
 0x1c2   :  { %s390_s11 = scalar_lea.hbm %s489_s3, 128 }
 0x1c3   :  { %p391_p13 = scmp.ne.s32.totalorder %s489_s3, %s390_s11  ;;  %p394_p0 = scmp.lt.u32.totalorder %s390_s11, %s489_s3 }
 0x1c5   :  { %p396_p1 = pnand %p394_p0, %p391_p13 }
 0x1c7   :  { %399 = shalt.err (!%p396_p1)
}
 0x1c8   :  { %242 = dma.vmem_to_hbm [thread:$0]  %s240_s7, 128, %s489_s3, [#allocation5]   ;;  %vm167_vm4 = vcmp.ge.s32.totalorder %v461_v28, 0  ;;  %vm171_vm5 = vcmp.lt.s32.totalorder %v461_v28, 128  ;;  %v226_v36 = vld [vmem:[%s490_s4] sm:$0xff] }
 0x1c9   :  { %vm172_vm6 = vmand %vm167_vm4, %vm171_vm5 }
 0x1ca   :  { %v254_v33 = vsel %vm172_vm6, 1.0, %v408_v23 }
 0x217   :  { %v166_v61 = vpop.xlane.xlu1 %165 }
 0x218   :  { %v175_v62 = vadd.f32 1.0, %v166_v61 }
 0x21a   :  { %v176_v63 = vmul.f32 0.5, %v175_v62 }
 0x21c   :  { %v177_v0 = vmul.f32 %v176_v63, %v176_v63 }
 0x21e   :  { %v178_v1 = vmul.f32 %v177_v0, %v176_v63 }
 0x220   :  { %v179_v2 = vmul.f32 2.0, %v178_v1 }
 0x222   :  { %v255_v3 = vadd.f32 -1.0, %v179_v2 }
 0x224   :  { %v256_v4 = vadd.f32 -0.4, %v255_v3  ;;  %v195_v5 = vadd.f32 0.4, %v255_v3 }
 0x226   :  { %v182_v6 = vmul.f32 30.0, %v256_v4  ;;  %v196_v7 = vmul.f32 30.0, %v195_v5 }
 0x228   :  { %v183_v8 = vadd.f32 0.6, %v182_v6  ;;  %v197_v9 = vadd.f32 0.6, %v196_v7 }
 0x22a   :  { %v184_v10 = vsub.f32 0.0, %v183_v8  ;;  %v199_v11 = vand.u32 2147483647, %v197_v9  ;;  %v198_v22 = vmax.f32 %v197_v9, 0.0 }
 0x22c   :  { %v186_v12 = vand.u32 2147483647, %v184_v10  ;;  %v200_v13 = vsub.f32 0.0, %v199_v11  ;;  %v185_v26 = vmax.f32 %v184_v10, 0.0 }
 0x22e   :  { %v187_v14 = vsub.f32 0.0, %v186_v12  ;;  %v201_v15 = vmul.f32 1.442695, %v200_v13 }
 0x230   :  { %v188_v16 = vmul.f32 1.442695, %v187_v14  ;;  %348 = vpow2.f32 %v201_v15 }
 0x232   :  { %350 = vpow2.f32 %v188_v16 }
 0x23a   :  { %v349_v17 = vpop.eup %348 }
 0x23b   :  { %v203_v18 = vadd.f32 1.0, %v349_v17 }
 0x23c   :  { %v351_v19 = vpop.eup %350 }
 0x23d   :  { %v190_v20 = vadd.f32 1.0, %v351_v19  ;;  %352 = vlog2.f32 %v203_v18 }
 0x23f   :  { %354 = vlog2.f32 %v190_v20 }
 0x247   :  { %v353_v21 = vpop.eup %352 }
 0x248   :  { %v205_v24 = vmul.f32 0.6931472, %v353_v21 }
 0x249   :  { %v355_v25 = vpop.eup %354 }
 0x24a   :  { %v192_v27 = vmul.f32 0.6931472, %v355_v25  ;;  %v206_v29 = vadd.f32 %v205_v24, %v198_v22 }
 0x24c   :  { %v193_v30 = vadd.f32 %v192_v27, %v185_v26  ;;  %v207_v32 = vmul.f32 0.01, %v206_v29 }
 0x24d   :  { %v228_v37 = vpop.xlane.xlu1 %227 }
 0x24e   :  { %v194_v31 = vmul.f32 0.023333333, %v193_v30 }
 0x250   :  { %v208_v34 = vsub.f32 %v194_v31, %v207_v32 }
 0x252   :  { %v209_v35 = vmul.f32 %v254_v33, %v208_v34 }
 0x254   :  { %v229_v38 = vadd.f32 %v228_v37, %v209_v35 }
 0x256   :  { %v230_v39 = vadd.f32 %v229_v38, %v226_v36 }
 0x258   :  { %232 = vst.msk [vmem:[%s490_s4] sm:$0xff] %vm43_vm0, %v230_v39 }
 0x259   :  { %402 = dma.done.wait [#allocation5], 128  }
 0x25a   :  { %403 = vsyncadd [#allocation5], 4294967168 }
 0x25b   :  { %250 = vsyncpa [#allocation4], 1 }
 0x25c   :  { %251 = vsyncpa [#allocation5], 1 }

</bundles_post_ra>
